<compile_context>
chip_gen: v7x
topology: tpu7x:2x2x1
jax: 0.10.0
libtpu: 0.0.40
codegen_flags: <defaults>
</compile_context>

<pallas_src>
import jax
import jax.numpy as jnp
from jax import lax
from jax.experimental import pallas as pl
from jax.experimental.pallas import tpu as pltpu


def _round_up(x, m):
    return (x + m - 1) // m * m


def _num_tensorcores():
    """2 if a single Pallas grid can shard across two TensorCores (v4/v5p
    megacore, v7x), else 1 (v5e/v6e have one TC per chip).  Heuristic only —
    it steers the tile split, never correctness."""
    try:
        kind = jax.devices()[0].device_kind.lower()
    except Exception:
        return 1
    if ("v4" in kind) or ("v5p" in kind) or ("v7" in kind) or ("7x" in kind):
        return 2
    return 1


def _value_net_kernel(x_ref, w_ref, b_ref, o_ref):
    """One batch tile of the value head, stored transposed.

    x_ref: (tile_b, d_in)  compute dtype (bf16)  -- pipelined per grid step
    w_ref: (n_pad, d_in)   compute dtype         -- resident (constant index_map)
    b_ref: (n_pad, 1)      float32               -- resident
    o_ref: (n_pad, tile_b) float32               -- lane-dense over the batch

    y_t = W @ x^T  (q@k^T-style dot_general: both operands contract on their
    last dim), f32 accumulation on the MXU, f32 bias add on the VPU.
    """
    y_t = lax.dot_general(
        w_ref[...], x_ref[...],
        dimension_numbers=(((1,), (1,)), ((), ())),
        preferred_element_type=jnp.float32,
    )
    o_ref[...] = (y_t + b_ref[...]).astype(o_ref.dtype)


def _pick_tile_b(batch, d_in, x_itemsize, num_tc, vmem_budget=20 << 20):
    """Batch-tile size.  VMEM accounting covers the double-buffered x tile
    (lane-padded to 128) and the double-buffered transposed output tile.
    Single biggest tile on 1-TC chips; >= 2 balanced 128-aligned tiles only on
    2-TC chips with enough work (batch >= 256)."""
    lane_d = _round_up(d_in, 128)
    per_row = 2 * lane_d * x_itemsize + 2 * 8 * 4      # x dbl-buf + out dbl-buf
    cap = max(128, min(8192, (vmem_budget // per_row) // 128 * 128))
    if num_tc >= 2 and batch >= 256:
        half = _round_up(pl.cdiv(batch, 2), 128)       # 2 balanced tiles -> 2 TCs
        return min(cap, half)
    return batch if batch <= cap else cap              # one tile if it fits


def prepare_value_net_params(weight, bias, compute_dtype=jnp.bfloat16):
    """One-time (hoisted out of the forward) padding + cast of nn.Linear params.

    weight: (num, input_dim) torch-layout;  bias: (num,)
    Returns (w_p, b_p, num):
      w_p: (round_up(num, 8), input_dim) in compute_dtype
      b_p: (round_up(num, 8), 1) float32 (kept f32 for the in-kernel f32 add)
    """
    num, d_in = weight.shape
    n_pad = _round_up(num, 8)
    w_p = jnp.zeros((n_pad, d_in), compute_dtype).at[:num, :].set(
        weight.astype(compute_dtype))
    b_p = jnp.zeros((n_pad, 1), jnp.float32).at[:num, 0].set(
        bias.astype(jnp.float32))
    return w_p, b_p, num


def value_net_forward(x, w_p, b_p, num=None, *, tile_b=None):
    """x: (B, input_dim); w_p/b_p from prepare_value_net_params.
    Returns (B, num) float32 == x @ W.T + b."""
    batch, d_in = x.shape
    n_pad = w_p.shape[0]
    assert w_p.shape == (n_pad, d_in)
    assert b_p.shape == (n_pad, 1)
    if num is None:
        num = n_pad

    # Operands go to the MXU in the weight's compute dtype (bf16 by default).
    # Ideally the producing layer already emits bf16 so this cast is a no-op.
    if x.dtype != w_p.dtype:
        x = x.astype(w_p.dtype)

    if tile_b is None:
        tile_b = _pick_tile_b(batch, d_in, x.dtype.itemsize, _num_tensorcores())
    if tile_b >= batch:
        tile_b = batch                               # single full-extent block
    else:
        tile_b = max(128, tile_b // 128 * 128)       # multi-block: 128-aligned lanes
        if tile_b >= batch:
            tile_b = batch

    grid = (pl.cdiv(batch, tile_b),)                 # ragged last block: no jnp.pad

    # Explicit scoped-VMEM limit from the tile-padded footprint, with headroom,
    # clamped to a range that is legal on v5e/v6e/v7x.
    lane_d = _round_up(d_in, 128)
    lane_t = _round_up(tile_b, 128)
    footprint = (2 * _round_up(tile_b, 16) * lane_d * x.dtype.itemsize     # x dbl-buf
                 + 2 * n_pad * lane_t * 4                                  # out dbl-buf
                 + _round_up(n_pad, 16) * lane_d * w_p.dtype.itemsize      # resident W
                 + n_pad * 128 * 4)                                        # resident b
    vmem_limit = int(min(max(2 * footprint + (4 << 20), 16 << 20), 32 << 20))

    out_t = pl.pallas_call(
        _value_net_kernel,
        out_shape=jax.ShapeDtypeStruct((n_pad, batch), jnp.float32),
        grid_spec=pltpu.PrefetchScalarGridSpec(
            num_scalar_prefetch=0,
            grid=grid,
            in_specs=[
                pl.BlockSpec((tile_b, d_in), lambda i: (i, 0)),   # x tile (pipelined)
                # W and b have constant index_maps -> resident across the grid.
                # (pl.Buffered(1) could halve W's VMEM footprint on v7x for large
                #  d_in; left at the default here since W is tiny.)
                pl.BlockSpec((n_pad, d_in), lambda i: (0, 0)),
                pl.BlockSpec((n_pad, 1), lambda i: (0, 0)),
            ],
            out_specs=pl.BlockSpec((n_pad, tile_b), lambda i: (0, i)),
        ),
        compiler_params=pltpu.CompilerParams(
            dimension_semantics=("parallel",),       # batch axis: megacore-shardable
            vmem_limit_bytes=vmem_limit,
        ),
        cost_estimate=pl.CostEstimate(
            flops=2 * batch * d_in * n_pad,
            transcendentals=0,
            bytes_accessed=(x.size * x.dtype.itemsize
                            + w_p.size * w_p.dtype.itemsize
                            + b_p.size * b_p.dtype.itemsize
                            + n_pad * batch * 4),
        ),
    )(x, w_p, b_p)

    # Trivial epilogue: only `num` real rows -> (B, num).
    return out_t[:num, :].T


def init_value_net_params(key, input_dim, num=1, compute_dtype=jnp.bfloat16):
    """Mirror ValueNet's non-noisy init: weight = norm_col_init(randn, 0.1)
    (each torch weight row scaled to L2-norm 0.1), bias = 0.  Returns
    kernel-ready (padded / pre-cast) params plus the raw f32 torch-layout
    weight/bias for reference checks."""
    w = jax.random.normal(key, (num, input_dim), jnp.float32)
    w = w * (0.1 / jnp.sqrt(jnp.sum(w * w, axis=1, keepdims=True)))
    b = jnp.zeros((num,), jnp.float32)
    w_p, b_p, _ = prepare_value_net_params(w, b, compute_dtype)
    return w_p, b_p, w, b


if __name__ == "__main__":
    batch, input_dim, num = 64, 32, 1

    key = jax.random.PRNGKey(0)
    kx, kp = jax.random.split(key)
    x_f32 = jax.random.normal(kx, (batch, input_dim), jnp.float32)
    w_p, b_p, w_raw, b_raw = init_value_net_params(kp, input_dim, num)

    # The producing layer of a bf16 network hands us bf16 activations, so the
    # in-wrapper cast is a no-op and the kernel reads half the bytes.
    x = x_f32.astype(jnp.bfloat16)

    out = jax.block_until_ready(value_net_forward(x, w_p, b_p, num))

    # Pure-JAX reference on the same bf16-rounded operands, f32 math.
    ref = (x.astype(jnp.float32)
           @ w_raw.astype(jnp.bfloat16).astype(jnp.float32).T
           + b_raw)
    assert out.shape == (batch, num)
    assert out.dtype == jnp.float32
    assert jnp.allclose(out, ref, atol=2e-3, rtol=2e-3)

    print("KERNEL_OK")
</pallas_src>

<mosaic_0001>
module attributes {stable_mosaic.version = 11 : i64} {
  func.func @_value_net_kernel(%arg0: i32, %arg1: memref<64x32xbf16, #tpu.memory_space<vmem>>, %arg2: memref<8x32xbf16, #tpu.memory_space<vmem>>, %arg3: memref<8x1xf32, #tpu.memory_space<vmem>>, %arg4: memref<8x64xf32, #tpu.memory_space<vmem>>) attributes {dimension_semantics = [#tpu.dimension_semantics<parallel>], iteration_bounds = array<i64: 1>, scalar_prefetch = 0 : i64, scratch_operands = 0 : i64, tpu.core_type = #tpu.core_type<tc>, window_params = [{transform_indices = @transform_0, window_bounds = array<i64: 64, 32>}, {pipeline_mode = #tpu.pipeline_mode<synchronous>, transform_indices = @transform_1, window_bounds = array<i64: 8, 32>}, {pipeline_mode = #tpu.pipeline_mode<synchronous>, transform_indices = @transform_2, window_bounds = array<i64: 8, 1>}, {transform_indices = @transform_3, window_bounds = array<i64: 8, 64>}]} {
    %c0 = arith.constant 0 : index
    %c0_0 = arith.constant 0 : index
    %0 = vector.load %arg2[%c0, %c0_0] : memref<8x32xbf16, #tpu.memory_space<vmem>>, vector<8x32xbf16>
    %c0_1 = arith.constant 0 : index
    %c0_2 = arith.constant 0 : index
    %1 = vector.load %arg1[%c0_1, %c0_2] : memref<64x32xbf16, #tpu.memory_space<vmem>>, vector<64x32xbf16>
    %cst = arith.constant dense<0.000000e+00> : vector<8x64xf32>
    %2 = tpu.matmul %0, %1, %cst {dimension_numbers = #tpu.dot_dimension_numbers<[1], [1], [0], [0], [0, 0, 1, 0], [], []>} : vector<8x32xbf16>, vector<64x32xbf16>, vector<8x64xf32> -> vector<8x64xf32>
    %c0_3 = arith.constant 0 : index
    %c0_4 = arith.constant 0 : index
    %3 = vector.load %arg3[%c0_3, %c0_4] : memref<8x1xf32, #tpu.memory_space<vmem>>, vector<8x1xf32>
    %4 = vector.broadcast %3 : vector<8x1xf32> to vector<8x64xf32>
    %5 = arith.addf %2, %4 : vector<8x64xf32>
    %c0_5 = arith.constant 0 : index
    %c0_6 = arith.constant 0 : index
    %6 = vector.load %arg4[%c0_5, %c0_6] : memref<8x64xf32, #tpu.memory_space<vmem>>, vector<8x64xf32>
    tpu.vector_store %arg4[%c0_5, %c0_6], %5 {strides = array<i32>} : memref<8x64xf32, #tpu.memory_space<vmem>>, vector<8x64xf32>,
    return
  }
  func.func @transform_0(%arg0: i32) -> (i32, i32) {
    %c0_i32 = arith.constant 0 : i32
    %c0_i32_0 = arith.constant 0 : i32
    return %arg0, %c0_i32 : i32, i32
  }
  func.func @transform_1(%arg0: i32) -> (i32, i32) {
    %c0_i32 = arith.constant 0 : i32
    %c0_i32_0 = arith.constant 0 : i32
    %c0_i32_1 = arith.constant 0 : i32
    return %c0_i32, %c0_i32_0 : i32, i32
  }
  func.func @transform_2(%arg0: i32) -> (i32, i32) {
    %c0_i32 = arith.constant 0 : i32
    %c0_i32_0 = arith.constant 0 : i32
    %c0_i32_1 = arith.constant 0 : i32
    return %c0_i32, %c0_i32_0 : i32, i32
  }
  func.func @transform_3(%arg0: i32) -> (i32, i32) {
    %c0_i32 = arith.constant 0 : i32
    %c0_i32_0 = arith.constant 0 : i32
    return %c0_i32, %arg0 : i32, i32
  }
}

</mosaic_0001>

<bundles_post_ra>
// kernel: tpu_custom_call.1
= control target key start
LH: loop header
LB: loop body
LE: loop exit
PB: predicated region body
PF: predicated region fallthrough
CT: control target
= control target key end

     0   :  { %v178_v1 = vmov 0.0   ;;  %vm51_vm0 = vcmask 261120   ;;  %vm179_vm1 = vmmov 0   ;;  %v180_v5 = vmov 0   ;;  %s237_s0 = inlined_call_operand.vmem [shape: bf16[64,32], index: 0, kind: input, shape index: {}]   ;;  %s238_s1 = inlined_call_operand.vmem [shape: bf16[8,32], index: 1, kind: input, shape index: {}]   ;;  %s239_s2 = inlined_call_operand.vmem [shape: f32[8,1], index: 2, kind: input, shape index: {}]   ;;  %s240_s3 = inlined_call_operand.hbm [shape: f32[8,64], index: 3, kind: output, shape index: {}]  }
   0x1   :  { %v150_v0 = vld [vmem:[%s237_s0] sm:$0xff]   ;;  %133 = vmatprep.subr.bf16.mxu0 %v178_v1  ;;  %v151_v3 = vld [vmem:[%s237_s0 + $0x8] sm:$0xff]   ;;  %141 = vmatprep.mubr.msk.bf16.mxu0 %vm179_vm1, %v178_v1 }
   0x2   :  { %v56_v2 = vsel %vm51_vm0, %v150_v0, 0  ;;  %v25_v4 = vld [vmem:[%s239_s2] sm:$0xff]  ;;  %149 = vset.pattern.permute.xlu0 %v180_v5 }
   0x3   :  { %134 = vmatpush3.bf16.xpose.msra.mxu0 %v56_v2 }
   0x4   :  { %135 = vmatprep.subr.bf16.mxu0 %v178_v1 }
   0x5   :  { %8 = vsyncpa [#allocation3], 0  ;;  %28 = vperm.xlu0 %149, %v25_v4   ;;  %v59_v6 = vsel %vm51_vm0, %v151_v3, 0  ;;  %v152_v7 = vld [vmem:[%s237_s0 + $0x10] sm:$0xff]   ;;  %v153_v9 = vld [vmem:[%s237_s0 + $0x18] sm:$0xff]   ;;  %s181_s23 = smov [#allocation2]  }
   0x6   :  { %v62_v8 = vsel %vm51_vm0, %v152_v7, 0  ;;  %v65_v10 = vsel %vm51_vm0, %v153_v9, 0  ;;  %v16_v11 = vld [vmem:[%s238_s1] sm:$0xf]  ;;  %s115_s24 = sshll.u32 %s181_s23, 4  ;;  %vm107_vm2 = vcmask 523264   ;;  %s116_s24 = int_to_ptr.vmem [resolvable:$true] %s115_s24 }
   0x7   :  { %s154_s0 = scalar_lea.vmem %s116_s24, 128  ;;  %p159_p1 = scmp.lt.s32.totalorder %s116_s24, %s116_s24 }
   0x8   :  { %p155_p0 = scmp.ne.s32.totalorder %s116_s24, %s154_s0  ;;  %p160_p2 = scmp.lt.s32.totalorder %s154_s0, %s154_s0 }
   0xa   :  { %p161_p3 = por %p160_p2, %p159_p1 }
   0xb   :  { %136 = vmatpush3.bf16.xpose.msra.mxu0 %v59_v6 }
   0xc   :  { %137 = vmatprep.subr.bf16.mxu0 %v178_v1  ;;  %p162_p4 = pnand %p161_p3, %p155_p0 }
  0x13   :  { %138 = vmatpush3.bf16.xpose.msra.mxu0 %v62_v8 }
  0x14   :  { %139 = vmatprep.subr.bf16.mxu0 %v178_v1 }
  0x1b   :  { %140 = vmatpush3.bf16.xpose.msra.mxu0 %v65_v10 }
  0x22   :  { %142 = vmatmul.mubr.msk.bf16.vlgmr.msra.gmra.mrb[0].mxu0 %vm51_vm0, %v16_v11 }
  0x84   :  { %v29_v12 = vpop.permute.xlu0 %28 }
  0xf5   :  { %v101_v13 = vpop.f32.mrb[0].mxu0 }
  0xf6   :  { %v102_v14 = vadd.f32 %v101_v13, %v29_v12  ;;  %v143_v15 = vpop.f32.mrb[1].mxu0 }
  0xf7   :  { %v104_v16 = vpop.f32.mrb[2].mxu0 }
  0xf8   :  { %v144_v17 = vpop.f32.mrb[3].mxu0  ;;  %108 = vst.msk [vmem:[#allocation2] sm:$0xff] %vm107_vm2, %v102_v14 }
  0xf9   :  { %165 = shalt.err (!%p162_p4)
}
  0xfa   :  { %s166_s26 = scalar_lea.hbm %s240_s3, 128 }
  0xfb   :  { %p167_p5 = scmp.ne.s32.totalorder %s240_s3, %s166_s26  ;;  %p170_p6 = scmp.lt.u32.totalorder %s166_s26, %s240_s3 }
  0xfd   :  { %p172_p7 = pnand %p170_p6, %p167_p5 }
  0xff   :  { %175 = shalt.err (!%p172_p7)
}
 0x100   :  { %118 = dma.vmem_to_hbm [thread:$0]  %s116_s24, 128, %s240_s3, [#allocation3]  }
 0x101   :  { %176 = dma.done.wait [#allocation3], 128  }
 0x102   :  { %177 = vsyncadd [#allocation3], 4294967168 }
 0x103   :  { %122 = vsyncpa [#allocation3], 1 }

</bundles_post_ra>
